<compile_context>
chip_gen: v7x
topology: tpu7x:2x2x1
jax: 0.10.0
libtpu: 0.0.40
codegen_flags: <defaults>
</compile_context>

<pallas_src>
import jax
import jax.numpy as jnp
from jax.experimental import pallas as pl
from jax.experimental.pallas import tpu as pltpu

_SUBLANE = 8
_LANE = 128
_TILE_BUDGET_BYTES = 2 * 1024 * 1024  # per-buffer tile budget, OK on v5e/v6e/v7x


def _sigmoid_mul_kernel(gate_ref, x_ref, o_ref):
    # gate_ref: (TC, 1)   -- per-channel gate logits (channels on sublanes)
    # x_ref:    (TC, THW) -- feature map, channels on sublanes, H*W on lanes
    g = jax.nn.sigmoid(gate_ref[...].astype(jnp.float32))   # f32 sigmoid on EUP
    # Multiply in the feature-map dtype (bf16 stays bf16 -> half the vld/vst
    # and vreg pressure on v6e/v7x; identical math for f32).
    o_ref[...] = (g.astype(x_ref.dtype) * x_ref[...]).astype(o_ref.dtype)


def _plan_tiles(C: int, HW: int, itemsize: int, budget_bytes: int):
    """Pick (TC, THW) obeying the (8, 128) block rules within a byte budget.

    Block-shape rules: TC must be a multiple of 8 or equal C; THW must be a
    multiple of 128 or equal HW.  Ragged last grid blocks are fine.
    """
    # Whole (C, HW) slab per batch if it fits the budget.
    if C * HW * itemsize <= budget_bytes:
        return C, HW
    # Prefer keeping HW fully lane-dense and tiling channels in 8s.
    rows = budget_bytes // (HW * itemsize)
    if C > _SUBLANE and rows >= _SUBLANE:
        tc = min(C, (rows // _SUBLANE) * _SUBLANE)
        return tc, HW
    # Otherwise tile both: minimal sublane tile, largest 128-multiple of lanes
    # that fits the budget.
    tc = C if C < _SUBLANE else _SUBLANE
    cols = budget_bytes // (max(tc, 1) * itemsize)
    if HW <= _LANE or cols >= HW:
        thw = HW
    else:
        thw = max(_LANE, (cols // _LANE) * _LANE)
    return tc, thw


def sigmoid_mul(x197, x193):
    """Replicates: x199 = sigmoid(x197) * x193.

    x197: (N, C, 1, 1)   gate logits
    x193: (N, C, H, W)   feature map
    returns (N, C, H, W)
    """
    N, C, H, W = x193.shape
    assert x197.shape == (N, C, 1, 1)
    HW = H * W

    # Native layout: contiguous reshapes only (no transposes, no extra passes).
    x = x193.reshape(N, C, HW)          # (N, C, HW)  -- HW on lanes
    gate = x197.reshape(N, C, 1)        # (N, C, 1)   -- broadcast along lanes

    itemsize = jnp.dtype(x193.dtype).itemsize
    TC, THW = _plan_tiles(C, HW, itemsize, _TILE_BUDGET_BYTES)
    n_ct = pl.cdiv(C, TC)
    n_ht = pl.cdiv(HW, THW)
    grid = (N, n_ct, n_ht)

    # Double-buffered x-in + out tiles dominate VMEM; gate tiles are tiny.
    tile_bytes = TC * THW * itemsize
    vmem_limit = min(64 * 1024 * 1024,
                     max(16 * 1024 * 1024, 6 * tile_bytes + (1 << 20)))

    cost = pl.CostEstimate(
        flops=N * C * HW,                      # one multiply per element
        transcendentals=N * n_ct * n_ht * TC,  # sigmoid recomputed per tile
        bytes_accessed=(2 * N * C * HW + N * C) * itemsize,
    )

    out = pl.pallas_call(
        _sigmoid_mul_kernel,
        out_shape=jax.ShapeDtypeStruct((N, C, HW), x193.dtype),
        grid_spec=pltpu.PrefetchScalarGridSpec(
            num_scalar_prefetch=0,
            grid=grid,
            in_specs=[
                # Gate block stays resident across the HW grid axis.
                pl.BlockSpec((pl.Squeezed(), TC, 1), lambda n, c, h: (n, c, 0)),
                pl.BlockSpec((pl.Squeezed(), TC, THW), lambda n, c, h: (n, c, h)),
            ],
            out_specs=pl.BlockSpec((pl.Squeezed(), TC, THW),
                                   lambda n, c, h: (n, c, h)),
        ),
        compiler_params=pltpu.CompilerParams(
            dimension_semantics=("parallel", "parallel", "parallel"),
            vmem_limit_bytes=int(vmem_limit),
        ),
        cost_estimate=cost,
    )(gate, x)

    return out.reshape(N, C, H, W)


if __name__ == "__main__":
    key = jax.random.PRNGKey(0)
    k1, k2, k3, k4 = jax.random.split(key, 4)

    # Case 1: the module's own shapes: (1, 440, 1, 1) x (1, 440, 7, 7)
    x197 = jax.random.normal(k1, (1, 440, 1, 1), dtype=jnp.float32)
    x193 = jax.random.normal(k2, (1, 440, 7, 7), dtype=jnp.float32)
    ref = jax.nn.sigmoid(x197) * x193
    out = jax.block_until_ready(sigmoid_mul(x197, x193))
    assert out.shape == (1, 440, 7, 7)
    assert jnp.allclose(out, ref, atol=1e-6, rtol=1e-6)

    # Case 2: batched small shapes to exercise the batch grid axis.
    g2 = jax.random.normal(k3, (2, 8, 1, 1), dtype=jnp.float32)
    x2 = jax.random.normal(k4, (2, 8, 4, 4), dtype=jnp.float32)
    ref2 = jax.nn.sigmoid(g2) * x2
    out2 = jax.block_until_ready(sigmoid_mul(g2, x2))
    assert out2.shape == (2, 8, 4, 4)
    assert jnp.allclose(out2, ref2, atol=1e-6, rtol=1e-6)

    # Case 3: bf16 path (bf16 multiply, f32 sigmoid on the tiny gate).
    g3 = jax.random.normal(k3, (2, 16, 1, 1), dtype=jnp.bfloat16)
    x3 = jax.random.normal(k4, (2, 16, 8, 8), dtype=jnp.bfloat16)
    ref3 = (jax.nn.sigmoid(g3.astype(jnp.float32)).astype(jnp.bfloat16) * x3)
    out3 = jax.block_until_ready(sigmoid_mul(g3, x3))
    assert out3.shape == (2, 16, 8, 8)
    assert jnp.allclose(out3.astype(jnp.float32), ref3.astype(jnp.float32),
                        atol=2e-2, rtol=2e-2)

    print("KERNEL_OK")
</pallas_src>

<mosaic_0001>
module attributes {stable_mosaic.version = 11 : i64} {
  func.func @_sigmoid_mul_kernel(%arg0: i32, %arg1: i32, %arg2: i32, %arg3: memref<1x440x1xf32, #tpu.memory_space<vmem>>, %arg4: memref<1x440x49xf32, #tpu.memory_space<vmem>>, %arg5: memref<1x440x49xf32, #tpu.memory_space<vmem>>) attributes {dimension_semantics = [#tpu.dimension_semantics<parallel>, #tpu.dimension_semantics<parallel>, #tpu.dimension_semantics<parallel>], iteration_bounds = array<i64: 1, 1, 1>, scalar_prefetch = 0 : i64, scratch_operands = 0 : i64, tpu.core_type = #tpu.core_type<tc>, window_params = [{transform_indices = @transform_0, window_bounds = array<i64: 1, 440, 1>}, {transform_indices = @transform_1, window_bounds = array<i64: 1, 440, 49>}, {transform_indices = @transform_2, window_bounds = array<i64: 1, 440, 49>}]} {
    %c0 = arith.constant 0 : index
    %c0_0 = arith.constant 0 : index
    %c0_1 = arith.constant 0 : index
    %0 = vector.load %arg3[%c0, %c0_0, %c0_1] : memref<1x440x1xf32, #tpu.memory_space<vmem>>, vector<1x440x1xf32>
    %1 = vector.shape_cast %0 : vector<1x440x1xf32> to vector<440x1xf32>
    %2 = arith.negf %1 : vector<440x1xf32>
    %3 = math.exp %2 : vector<440x1xf32>
    %cst = arith.constant 1.000000e+00 : f32
    %4 = vector.broadcast %cst : f32 to vector<440x1xf32>
    %5 = arith.addf %4, %3 : vector<440x1xf32>
    %6 = arith.divf %4, %5 : vector<440x1xf32>
    %c0_2 = arith.constant 0 : index
    %c0_3 = arith.constant 0 : index
    %c0_4 = arith.constant 0 : index
    %7 = vector.load %arg4[%c0_2, %c0_3, %c0_4] : memref<1x440x49xf32, #tpu.memory_space<vmem>>, vector<1x440x49xf32>
    %8 = vector.shape_cast %7 : vector<1x440x49xf32> to vector<440x49xf32>
    %9 = vector.broadcast %6 : vector<440x1xf32> to vector<440x49xf32>
    %10 = arith.mulf %9, %8 : vector<440x49xf32>
    %c0_5 = arith.constant 0 : index
    %c0_6 = arith.constant 0 : index
    %c0_7 = arith.constant 0 : index
    %11 = vector.load %arg5[%c0_5, %c0_6, %c0_7] : memref<1x440x49xf32, #tpu.memory_space<vmem>>, vector<1x440x49xf32>
    %12 = vector.shape_cast %11 : vector<1x440x49xf32> to vector<440x49xf32>
    %13 = vector.shape_cast %10 : vector<440x49xf32> to vector<1x440x49xf32>
    tpu.vector_store %arg5[%c0_5, %c0_6, %c0_7], %13 {strides = array<i32>} : memref<1x440x49xf32, #tpu.memory_space<vmem>>, vector<1x440x49xf32>,
    return
  }
  func.func @transform_0(%arg0: i32, %arg1: i32, %arg2: i32) -> (i32, i32, i32) {
    %c0_i32 = arith.constant 0 : i32
    %c0_i32_0 = arith.constant 0 : i32
    return %arg0, %arg1, %c0_i32 : i32, i32, i32
  }
  func.func @transform_1(%arg0: i32, %arg1: i32, %arg2: i32) -> (i32, i32, i32) {
    %c0_i32 = arith.constant 0 : i32
    return %arg0, %arg1, %arg2 : i32, i32, i32
  }
  func.func @transform_2(%arg0: i32, %arg1: i32, %arg2: i32) -> (i32, i32, i32) {
    %c0_i32 = arith.constant 0 : i32
    return %arg0, %arg1, %arg2 : i32, i32, i32
  }
}

</mosaic_0001>

<bundles_post_ra>
// kernel: tpu_custom_call.1
= control target key start
LH: loop header
LB: loop body
LE: loop exit
PB: predicated region body
PF: predicated region fallthrough
CT: control target
= control target key end

     0   :  { %v1119_v0 = vmov 0   ;;  %vm781_vm0 = vcmask 400384   ;;  %s1685_s0 = inlined_call_operand.vmem [shape: f32[1,440,1], index: 0, kind: input, shape index: {}]   ;;  %s1686_s1 = inlined_call_operand.vmem [shape: f32[1,440,49], index: 1, kind: input, shape index: {}]   ;;  %s1687_s2 = inlined_call_operand.vmem [shape: f32[1,440,49], index: 2, kind: output, shape index: {}]  }
   0x1   :  { %898 = vset.pattern.permute.xlu1 %v1119_v0  ;;  %897 = vset.pattern.permute.xlu0 %v1119_v0  ;;  %v13_v1 = vld [vmem:[%s1685_s0 + $0x10] sm:$0xff]  ;;  %v11_v2 = vld [vmem:[%s1685_s0] sm:$0xff]  ;;  %v14_v3 = vld [vmem:[%s1685_s0 + $0x18] sm:$0xff] }
   0x2   :  { %v843_v4 = vmul.f32 -1.442695, %v13_v1  ;;  %v841_v5 = vmul.f32 -1.442695, %v11_v2  ;;  %v844_v6 = vmul.f32 -1.442695, %v14_v3 }
   0x3   :  { %v12_v7 = vld [vmem:[%s1685_s0 + $0x8] sm:$0xff]  ;;  %v15_v9 = vld [vmem:[%s1685_s0 + $0x20] sm:$0xff]  ;;  %v18_v13 = vld [vmem:[%s1685_s0 + $0x38] sm:$0xff] }
   0x4   :  { %v16_v8 = vld [vmem:[%s1685_s0 + $0x28] sm:$0xff]  ;;  %899 = vpow2.f32 %v843_v4  ;;  %v842_v10 = vmul.f32 -1.442695, %v12_v7  ;;  %v845_v12 = vmul.f32 -1.442695, %v15_v9  ;;  %v17_v14 = vld [vmem:[%s1685_s0 + $0x30] sm:$0xff] }
   0x5   :  { %v846_v11 = vmul.f32 -1.442695, %v16_v8  ;;  %901 = vpow2.f32 %v841_v5  ;;  %v20_v15 = vld [vmem:[%s1685_s0 + $0x48] sm:$0xff]  ;;  %v848_v16 = vmul.f32 -1.442695, %v18_v13  ;;  %v19_v18 = vld [vmem:[%s1685_s0 + $0x40] sm:$0xff] }
   0x6   :  { %903 = vpow2.f32 %v844_v6  ;;  %v847_v17 = vmul.f32 -1.442695, %v17_v14  ;;  %v22_v19 = vld [vmem:[%s1685_s0 + $0x58] sm:$0xff]  ;;  %v850_v20 = vmul.f32 -1.442695, %v20_v15  ;;  %v21_v21 = vld [vmem:[%s1685_s0 + $0x50] sm:$0xff] }
   0x7   :  { %905 = vpow2.f32 %v842_v10  ;;  %v849_v22 = vmul.f32 -1.442695, %v19_v18  ;;  %v24_v23 = vld [vmem:[%s1685_s0 + $0x68] sm:$0xff]  ;;  %v852_v24 = vmul.f32 -1.442695, %v22_v19  ;;  %v23_v46 = vld [vmem:[%s1685_s0 + $0x60] sm:$0xff] }
   0x8   :  { %907 = vpow2.f32 %v846_v11  ;;  %v851_v25 = vmul.f32 -1.442695, %v21_v21  ;;  %v854_v26 = vmul.f32 -1.442695, %v24_v23  ;;  %v26_v49 = vld [vmem:[%s1685_s0 + $0x78] sm:$0xff]  ;;  %v25_v52 = vld [vmem:[%s1685_s0 + $0x70] sm:$0xff] }
   0x9   :  { %909 = vpow2.f32 %v845_v12  ;;  %v853_v55 = vmul.f32 -1.442695, %v23_v46  ;;  %v28_v56 = vld [vmem:[%s1685_s0 + $0x88] sm:$0xff]  ;;  %v856_v59 = vmul.f32 -1.442695, %v26_v49  ;;  %v27_v60 = vld [vmem:[%s1685_s0 + $0x80] sm:$0xff] }
   0xa   :  { %911 = vpow2.f32 %v848_v16  ;;  %v855_v62 = vmul.f32 -1.442695, %v25_v52  ;;  %v30_v63 = vld [vmem:[%s1685_s0 + $0x98] sm:$0xff]  ;;  %v858_v1 = vmul.f32 -1.442695, %v28_v56  ;;  %v29_v2 = vld [vmem:[%s1685_s0 + $0x90] sm:$0xff] }
   0xb   :  { %913 = vpow2.f32 %v847_v17  ;;  %v857_v4 = vmul.f32 -1.442695, %v27_v60  ;;  %v32_v5 = vld [vmem:[%s1685_s0 + $0xa8] sm:$0xff]  ;;  %v860_v7 = vmul.f32 -1.442695, %v30_v63  ;;  %v31_v8 = vld [vmem:[%s1685_s0 + $0xa0] sm:$0xff] }
   0xc   :  { %915 = vpow2.f32 %v850_v20  ;;  %v859_v10 = vmul.f32 -1.442695, %v29_v2  ;;  %v34_v11 = vld [vmem:[%s1685_s0 + $0xb8] sm:$0xff]  ;;  %v862_v13 = vmul.f32 -1.442695, %v32_v5  ;;  %v33_v14 = vld [vmem:[%s1685_s0 + $0xb0] sm:$0xff] }
   0xd   :  { %917 = vpow2.f32 %v849_v22  ;;  %v861_v16 = vmul.f32 -1.442695, %v31_v8  ;;  %v36_v17 = vld [vmem:[%s1685_s0 + $0xc8] sm:$0xff]  ;;  %v864_v19 = vmul.f32 -1.442695, %v34_v11  ;;  %v35_v20 = vld [vmem:[%s1685_s0 + $0xc0] sm:$0xff] }
   0xe   :  { %v900_v27 = vpop.eup %899  ;;  %919 = vpow2.f32 %v852_v24  ;;  %v863_v22 = vmul.f32 -1.442695, %v33_v14  ;;  %v866_v24 = vmul.f32 -1.442695, %v36_v17 }
   0xf   :  { %v902_v28 = vpop.eup %901  ;;  %v233_v29 = vadd.f32 1.0, %v900_v27  ;;  %921 = vpow2.f32 %v851_v25 }
  0x10   :  { %v904_v30 = vpop.eup %903  ;;  %v231_v31 = vadd.f32 1.0, %v902_v28  ;;  %923 = vpow2.f32 %v854_v26  ;;  %v865_v26 = vmul.f32 -1.442695, %v35_v20 }
  0x11   :  { %v906_v32 = vpop.eup %905  ;;  %925 = vrcp.f32 %v233_v29  ;;  %v234_v33 = vadd.f32 1.0, %v904_v30 }
  0x12   :  { %v908_v34 = vpop.eup %907  ;;  %927 = vrcp.f32 %v231_v31  ;;  %v232_v35 = vadd.f32 1.0, %v906_v32 }
  0x13   :  { %v910_v36 = vpop.eup %909  ;;  %929 = vrcp.f32 %v234_v33  ;;  %v236_v37 = vadd.f32 1.0, %v908_v34 }
  0x14   :  { %v912_v38 = vpop.eup %911  ;;  %931 = vrcp.f32 %v232_v35  ;;  %v235_v39 = vadd.f32 1.0, %v910_v36 }
  0x15   :  { %v914_v40 = vpop.eup %913  ;;  %933 = vrcp.f32 %v236_v37  ;;  %v238_v41 = vadd.f32 1.0, %v912_v38 }
  0x16   :  { %v916_v42 = vpop.eup %915  ;;  %935 = vrcp.f32 %v235_v39  ;;  %v237_v43 = vadd.f32 1.0, %v914_v40 }
  0x17   :  { %v918_v44 = vpop.eup %917  ;;  %937 = vrcp.f32 %v238_v41  ;;  %v240_v45 = vadd.f32 1.0, %v916_v42 }
  0x18   :  { %v920_v47 = vpop.eup %919  ;;  %939 = vrcp.f32 %v237_v43  ;;  %v239_v48 = vadd.f32 1.0, %v918_v44 }
  0x19   :  { %v922_v50 = vpop.eup %921  ;;  %941 = vrcp.f32 %v240_v45  ;;  %v242_v51 = vadd.f32 1.0, %v920_v47  ;;  %v38_v47 = vld [vmem:[%s1685_s0 + $0xd8] sm:$0xff] }
  0x1a   :  { %v924_v53 = vpop.eup %923  ;;  %943 = vrcp.f32 %v239_v48  ;;  %v241_v54 = vadd.f32 1.0, %v922_v50  ;;  %v37_v50 = vld [vmem:[%s1685_s0 + $0xd0] sm:$0xff]  ;;  %v868_v56 = vmul.f32 -1.442695, %v38_v47 }
  0x1b   :  { %v926_v57 = vpop.eup %925  ;;  %945 = vrcp.f32 %v242_v51  ;;  %v244_v58 = vadd.f32 1.0, %v924_v53  ;;  %v40_v53 = vld [vmem:[%s1685_s0 + $0xe8] sm:$0xff]  ;;  %v867_v60 = vmul.f32 -1.442695, %v37_v50 }
  0x1c   :  { %v928_v61 = vpop.eup %927  ;;  %463 = vperm.xlu1 %898, %v926_v57   ;;  %947 = vrcp.f32 %v241_v54  ;;  %v39_v57 = vld [vmem:[%s1685_s0 + $0xe0] sm:$0xff]  ;;  %v870_v63 = vmul.f32 -1.442695, %v40_v53 }
  0x1d   :  { %v930_v0 = vpop.eup %929  ;;  %453 = vperm.xlu0 %897, %v928_v61   ;;  %949 = vrcp.f32 %v244_v58  ;;  %v42_v61 = vld [vmem:[%s1685_s0 + $0xf8] sm:$0xff]  ;;  %v869_v2 = vmul.f32 -1.442695, %v39_v57 }
  0x1e   :  { %v932_v3 = vpop.eup %931  ;;  %951 = vpow2.f32 %v853_v55  ;;  %v872_v5 = vmul.f32 -1.442695, %v42_v61  ;;  %v54_v57 = vld [vmem:[%s1685_s0 + $0x158] sm:$0xff] }
  0x1f   :  { %v934_v6 = vpop.eup %933  ;;  %953 = vpow2.f32 %v856_v59 }
  0x20   :  { %v936_v9 = vpop.eup %935  ;;  %468 = vperm.xlu1 %898, %v930_v0   ;;  %955 = vpow2.f32 %v855_v62  ;;  %v41_v0 = vld [vmem:[%s1685_s0 + $0xf0] sm:$0xff] }
  0x21   :  { %v938_v12 = vpop.eup %937  ;;  %458 = vperm.xlu0 %897, %v932_v3   ;;  %957 = vpow2.f32 %v858_v1  ;;  %v44_v3 = vld [vmem:[%s1685_s0 + $0x108] sm:$0xff]  ;;  %v871_v8 = vmul.f32 -1.442695, %v41_v0 }
  0x22   :  { %v940_v15 = vpop.eup %939  ;;  %959 = vpow2.f32 %v857_v4  ;;  %v874_v11 = vmul.f32 -1.442695, %v44_v3 }
  0x23   :  { %v942_v18 = vpop.eup %941  ;;  %961 = vpow2.f32 %v860_v7 }
  0x24   :  { %v944_v21 = vpop.eup %943  ;;  %478 = vperm.xlu1 %898, %v934_v6   ;;  %963 = vpow2.f32 %v859_v10  ;;  %v43_v6 = vld [vmem:[%s1685_s0 + $0x100] sm:$0xff] }
  0x25   :  { %v946_v23 = vpop.eup %945  ;;  %473 = vperm.xlu0 %897, %v936_v9   ;;  %965 = vpow2.f32 %v862_v13  ;;  %v46_v9 = vld [vmem:[%s1685_s0 + $0x118] sm:$0xff]  ;;  %v873_v14 = vmul.f32 -1.442695, %v43_v6 }
  0x26   :  { %v948_v25 = vpop.eup %947  ;;  %967 = vpow2.f32 %v861_v16  ;;  %v876_v17 = vmul.f32 -1.442695, %v46_v9 }
  0x27   :  { %v950_v27 = vpop.eup %949  ;;  %969 = vpow2.f32 %v864_v19 }
  0x28   :  { %v952_v28 = vpop.eup %951  ;;  %488 = vperm.xlu1 %898, %v938_v12   ;;  %971 = vpow2.f32 %v863_v22  ;;  %v45_v12 = vld [vmem:[%s1685_s0 + $0x110] sm:$0xff] }
  0x29   :  { %v954_v29 = vpop.eup %953  ;;  %483 = vperm.xlu0 %897, %v940_v15   ;;  %v243_v30 = vadd.f32 1.0, %v952_v28  ;;  %973 = vpow2.f32 %v866_v24  ;;  %v48_v15 = vld [vmem:[%s1685_s0 + $0x128] sm:$0xff]  ;;  %v875_v20 = vmul.f32 -1.442695, %v45_v12 }
  0x2a   :  { %v956_v31 = vpop.eup %955  ;;  %v246_v32 = vadd.f32 1.0, %v954_v29  ;;  %975 = vpow2.f32 %v865_v26  ;;  %v878_v22 = vmul.f32 -1.442695, %v48_v15  ;;  %v60_v15 = vld [vmem:[%s1685_s0 + $0x188] sm:$0xff] }
  0x2b   :  { %v958_v33 = vpop.eup %957  ;;  %977 = vrcp.f32 %v243_v30  ;;  %v245_v34 = vadd.f32 1.0, %v956_v31 }
  0x2c   :  { %v960_v35 = vpop.eup %959  ;;  %498 = vperm.xlu1 %898, %v942_v18   ;;  %979 = vrcp.f32 %v246_v32  ;;  %v248_v36 = vadd.f32 1.0, %v958_v33  ;;  %v47_v18 = vld [vmem:[%s1685_s0 + $0x120] sm:$0xff] }
  0x2d   :  { %v962_v37 = vpop.eup %961  ;;  %493 = vperm.xlu0 %897, %v944_v21   ;;  %981 = vrcp.f32 %v245_v34  ;;  %v247_v38 = vadd.f32 1.0, %v960_v35  ;;  %v877_v24 = vmul.f32 -1.442695, %v47_v18  ;;  %v59_v18 = vld [vmem:[%s1685_s0 + $0x180] sm:$0xff] }
  0x2e   :  { %v964_v39 = vpop.eup %963  ;;  %983 = vrcp.f32 %v248_v36  ;;  %v250_v40 = vadd.f32 1.0, %v962_v37 }
  0x2f   :  { %v966_v41 = vpop.eup %965  ;;  %985 = vrcp.f32 %v247_v38  ;;  %v249_v42 = vadd.f32 1.0, %v964_v39 }
  0x30   :  { %v968_v43 = vpop.eup %967  ;;  %508 = vperm.xlu1 %898, %v946_v23   ;;  %987 = vrcp.f32 %v250_v40  ;;  %v252_v44 = vadd.f32 1.0, %v966_v41 }
  0x31   :  { %v970_v45 = vpop.eup %969  ;;  %503 = vperm.xlu0 %897, %v948_v25   ;;  %989 = vrcp.f32 %v249_v42  ;;  %v251_v46 = vadd.f32 1.0, %v968_v43 }
  0x32   :  { %v972_v48 = vpop.eup %971  ;;  %991 = vrcp.f32 %v252_v44  ;;  %v254_v49 = vadd.f32 1.0, %v970_v45 }
  0x33   :  { %v974_v51 = vpop.eup %973  ;;  %993 = vrcp.f32 %v251_v46  ;;  %v253_v52 = vadd.f32 1.0, %v972_v48  ;;  %v49_v48 = vld [vmem:[%s1685_s0 + $0x130] sm:$0xff] }
  0x34   :  { %v976_v54 = vpop.eup %975  ;;  %518 = vperm.xlu1 %898, %v950_v27   ;;  %995 = vrcp.f32 %v254_v49  ;;  %v256_v55 = vadd.f32 1.0, %v974_v51  ;;  %v50_v27 = vld [vmem:[%s1685_s0 + $0x138] sm:$0xff]  ;;  %v52_v51 = vld [vmem:[%s1685_s0 + $0x148] sm:$0xff] }
  0x35   :  { %v978_v58 = vpop.eup %977  ;;  %997 = vrcp.f32 %v253_v52  ;;  %v255_v59 = vadd.f32 1.0, %v976_v54  ;;  %v880_v33 = vmul.f32 -1.442695, %v50_v27  ;;  %v51_v54 = vld [vmem:[%s1685_s0 + $0x140] sm:$0xff] }
  0x36   :  { %v980_v62 = vpop.eup %979  ;;  %513 = vperm.xlu0 %897, %v978_v58   ;;  %999 = vrcp.f32 %v256_v55 }
  0x37   :  { %v982_v1 = vpop.eup %981  ;;  %1001 = vrcp.f32 %v255_v59  ;;  %v882_v59 = vmul.f32 -1.442695, %v52_v51  ;;  %v65_v51 = vld [vmem:[%s1685_s0 + $0x1b0] sm:$0xff] }
  0x38   :  { %v984_v4 = vpop.eup %983  ;;  %528 = vperm.xlu1 %898, %v980_v62   ;;  %1003 = vpow2.f32 %v868_v56  ;;  %v879_v56 = vmul.f32 -1.442695, %v49_v48  ;;  %v881_v62 = vmul.f32 -1.442695, %v51_v54  ;;  %v63_v48 = vld [vmem:[%s1685_s0 + $0x1a0] sm:$0xff] }
  0x39   :  { %v986_v7 = vpop.eup %985  ;;  %1005 = vpow2.f32 %v867_v60  ;;  %v53_v60 = vld [vmem:[%s1685_s0 + $0x150] sm:$0xff] }
  0x3a   :  { %v988_v10 = vpop.eup %987  ;;  %523 = vperm.xlu0 %897, %v982_v1   ;;  %1007 = vpow2.f32 %v870_v63  ;;  %v56_v63 = vld [vmem:[%s1685_s0 + $0x168] sm:$0xff]  ;;  %v884_v1 = vmul.f32 -1.442695, %v54_v57  ;;  %v895_v57 = vmul.f32 -1.442695, %v65_v51  ;;  %v406_v51 = vld [vmem:[%s1686_s1 + $0x50] sm:$0xff] }
  0x3b   :  { %v990_v13 = vpop.eup %989  ;;  %1009 = vpow2.f32 %v869_v2  ;;  %v55_v2 = vld [vmem:[%s1685_s0 + $0x160] sm:$0xff] }
  0x3c   :  { %v992_v16 = vpop.eup %991  ;;  %538 = vperm.xlu1 %898, %v984_v4   ;;  %1011 = vpow2.f32 %v872_v5  ;;  %v883_v4 = vmul.f32 -1.442695, %v53_v60  ;;  %v58_v5 = vld [vmem:[%s1685_s0 + $0x178] sm:$0xff] }
  0x3d   :  { %v994_v19 = vpop.eup %993  ;;  %1013 = vpow2.f32 %v871_v8  ;;  %v57_v8 = vld [vmem:[%s1685_s0 + $0x170] sm:$0xff]  ;;  %v888_v12 = vmul.f32 -1.442695, %v58_v5 }
  0x3e   :  { %v996_v21 = vpop.eup %995  ;;  %533 = vperm.xlu0 %897, %v986_v7   ;;  %1015 = vpow2.f32 %v874_v11  ;;  %v886_v7 = vmul.f32 -1.442695, %v56_v63 }
  0x3f   :  { %v998_v23 = vpop.eup %997  ;;  %1017 = vpow2.f32 %v873_v14  ;;  %v887_v14 = vmul.f32 -1.442695, %v57_v8 }
  0x40   :  { %v1000_v25 = vpop.eup %999  ;;  %548 = vperm.xlu1 %898, %v988_v10   ;;  %1019 = vpow2.f32 %v876_v17  ;;  %v885_v10 = vmul.f32 -1.442695, %v55_v2 }
  0x41   :  { %v1002_v26 = vpop.eup %1001  ;;  %1021 = vpow2.f32 %v875_v20 }
  0x42   :  { %v1004_v28 = vpop.eup %1003  ;;  %543 = vperm.xlu0 %897, %v990_v13   ;;  %1023 = vpow2.f32 %v878_v22 }
  0x43   :  { %v1006_v29 = vpop.eup %1005  ;;  %v258_v30 = vadd.f32 1.0, %v1004_v28  ;;  %1025 = vpow2.f32 %v877_v24 }
  0x44   :  { %v1008_v31 = vpop.eup %1007  ;;  %558 = vperm.xlu1 %898, %v992_v16   ;;  %v257_v32 = vadd.f32 1.0, %v1006_v29  ;;  %v61_v29 = vld [vmem:[%s1685_s0 + $0x190] sm:$0xff] }
  0x45   :  { %v1010_v34 = vpop.eup %1009  ;;  %1027 = vrcp.f32 %v258_v30  ;;  %v260_v35 = vadd.f32 1.0, %v1008_v31 }
  0x46   :  { %v1012_v36 = vpop.eup %1011  ;;  %553 = vperm.xlu0 %897, %v994_v19   ;;  %1029 = vrcp.f32 %v257_v32  ;;  %v259_v37 = vadd.f32 1.0, %v1010_v34 }
  0x47   :  { %v1014_v38 = vpop.eup %1013  ;;  %1031 = vrcp.f32 %v260_v35  ;;  %v262_v39 = vadd.f32 1.0, %v1012_v36 }
  0x48   :  { %v1016_v40 = vpop.eup %1015  ;;  %568 = vperm.xlu1 %898, %v996_v21   ;;  %v261_v41 = vadd.f32 1.0, %v1014_v38  ;;  %1033 = vpow2.f32 %v880_v33  ;;  %v890_v21 = vmul.f32 -1.442695, %v60_v15 }
  0x49   :  { %v1018_v42 = vpop.eup %1017  ;;  %1035 = vrcp.f32 %v259_v37  ;;  %v264_v43 = vadd.f32 1.0, %v1016_v40  ;;  %v891_v37 = vmul.f32 -1.442695, %v61_v29 }
  0x4a   :  { %v1020_v44 = vpop.eup %1019  ;;  %563 = vperm.xlu0 %897, %v998_v23   ;;  %1037 = vrcp.f32 %v262_v39  ;;  %v263_v45 = vadd.f32 1.0, %v1018_v42  ;;  %v889_v23 = vmul.f32 -1.442695, %v59_v18 }
  0x4b   :  { %v1022_v46 = vpop.eup %1021  ;;  %1039 = vrcp.f32 %v261_v41  ;;  %v266_v47 = vadd.f32 1.0, %v1020_v44 }
  0x4c   :  { %v1024_v49 = vpop.eup %1023  ;;  %578 = vperm.xlu1 %898, %v1000_v25   ;;  %1041 = vrcp.f32 %v264_v43  ;;  %v265_v50 = vadd.f32 1.0, %v1022_v46  ;;  %v62_v25 = vld [vmem:[%s1685_s0 + $0x198] sm:$0xff]  ;;  %v64_v46 = vld [vmem:[%s1685_s0 + $0x1a8] sm:$0xff] }
  0x4d   :  { %v1026_v52 = vpop.eup %1025  ;;  %1043 = vrcp.f32 %v263_v45  ;;  %v268_v53 = vadd.f32 1.0, %v1024_v49  ;;  %v892_v32 = vmul.f32 -1.442695, %v62_v25 }
  0x4e   :  { %573 = vperm.xlu0 %897, %v1002_v26   ;;  %1045 = vrcp.f32 %v266_v47  ;;  %v267_v55 = vadd.f32 1.0, %v1026_v52 }
  0x4f   :  { %v1028_v58 = vpop.eup %1027  ;;  %1047 = vrcp.f32 %v265_v50 }
  0x50   :  { %v1030_v61 = vpop.eup %1029  ;;  %588 = vperm.xlu1 %898, %v1028_v58   ;;  %1049 = vrcp.f32 %v268_v53  ;;  %v894_v53 = vmul.f32 -1.442695, %v64_v46 }
  0x51   :  { %v1032_v0 = vpop.eup %1031  ;;  %1051 = vrcp.f32 %v267_v55  ;;  %v893_v55 = vmul.f32 -1.442695, %v63_v48 }
  0x52   :  { %v1034_v3 = vpop.eup %1033  ;;  %583 = vperm.xlu0 %897, %v1030_v61   ;;  %1053 = vpow2.f32 %v879_v56 }
  0x53   :  { %v1036_v6 = vpop.eup %1035  ;;  %1055 = vpow2.f32 %v882_v59  ;;  %v270_v17 = vadd.f32 1.0, %v1034_v3 }
  0x54   :  { %v1038_v9 = vpop.eup %1037  ;;  %598 = vperm.xlu1 %898, %v1032_v0   ;;  %1057 = vpow2.f32 %v881_v62 }
  0x55   :  { %v1040_v11 = vpop.eup %1039  ;;  %1059 = vpow2.f32 %v884_v1 }
  0x56   :  { %v1042_v13 = vpop.eup %1041  ;;  %593 = vperm.xlu0 %897, %v1036_v6   ;;  %1061 = vpow2.f32 %v883_v4 }
  0x57   :  { %v1044_v16 = vpop.eup %1043  ;;  %1063 = vpow2.f32 %v886_v7 }
  0x58   :  { %v1046_v19 = vpop.eup %1045  ;;  %608 = vperm.xlu1 %898, %v1038_v9   ;;  %1065 = vpow2.f32 %v885_v10 }
  0x59   :  { %v1048_v20 = vpop.eup %1047  ;;  %1067 = vpow2.f32 %v888_v12 }
  0x5a   :  { %v1050_v22 = vpop.eup %1049  ;;  %603 = vperm.xlu0 %897, %v1040_v11   ;;  %1069 = vpow2.f32 %v887_v14 }
  0x5b   :  { %v1052_v24 = vpop.eup %1051  ;;  %1071 = vrcp.f32 %v270_v17 }
  0x5c   :  { %v1054_v26 = vpop.eup %1053  ;;  %618 = vperm.xlu1 %898, %v1042_v13   ;;  %1073 = vpow2.f32 %v890_v21  ;;  %v396_v21 = vld [vmem:[%s1686_s1] sm:$0xff] }
  0x5d   :  { %v1056_v27 = vpop.eup %1055  ;;  %v269_v28 = vadd.f32 1.0, %v1054_v26  ;;  %1075 = vpow2.f32 %v889_v23  ;;  %v399_v26 = vld [vmem:[%s1686_s1 + $0x18] sm:$0xff] }
  0x5e   :  { %v1058_v30 = vpop.eup %1057  ;;  %613 = vperm.xlu0 %897, %v1044_v16   ;;  %v272_v31 = vadd.f32 1.0, %v1056_v27  ;;  %v397_v27 = vld [vmem:[%s1686_s1 + $0x8] sm:$0xff] }
  0x5f   :  { %v1060_v33 = vpop.eup %1059  ;;  %1077 = vrcp.f32 %v269_v28  ;;  %v271_v34 = vadd.f32 1.0, %v1058_v30 }
  0x60   :  { %v1062_v35 = vpop.eup %1061  ;;  %628 = vperm.xlu1 %898, %v1046_v19   ;;  %1079 = vrcp.f32 %v272_v31  ;;  %v274_v36 = vadd.f32 1.0, %v1060_v33  ;;  %v400_v33 = vld [vmem:[%s1686_s1 + $0x20] sm:$0xff] }
  0x61   :  { %v1064_v38 = vpop.eup %1063  ;;  %1081 = vrcp.f32 %v271_v34  ;;  %v273_v39 = vadd.f32 1.0, %v1062_v35 }
  0x62   :  { %v1066_v40 = vpop.eup %1065  ;;  %623 = vperm.xlu0 %897, %v1048_v20   ;;  %1083 = vpow2.f32 %v892_v32  ;;  %v276_v42 = vadd.f32 1.0, %v1064_v38  ;;  %v398_v20 = vld [vmem:[%s1686_s1 + $0x10] sm:$0xff]  ;;  %v401_v32 = vld [vmem:[%s1686_s1 + $0x28] sm:$0xff]  ;;  %v403_v38 = vld [vmem:[%s1686_s1 + $0x38] sm:$0xff] }
  0x63   :  { %v1068_v41 = vpop.eup %1067  ;;  %1085 = vrcp.f32 %v274_v36  ;;  %v275_v45 = vadd.f32 1.0, %v1066_v40 }
  0x64   :  { %v1070_v43 = vpop.eup %1069  ;;  %638 = vperm.xlu1 %898, %v1050_v22   ;;  %1087 = vpow2.f32 %v891_v37  ;;  %v278_v47 = vadd.f32 1.0, %v1068_v41 }
  0x65   :  { %v1072_v44 = vpop.eup %1071  ;;  %1089 = vrcp.f32 %v273_v39  ;;  %v277_v50 = vadd.f32 1.0, %v1070_v43  ;;  %v402_v39 = vld [vmem:[%s1686_s1 + $0x30] sm:$0xff] }
  0x66   :  { %633 = vperm.xlu0 %897, %v1052_v24   ;;  %v1074_v49 = vpop.eup %1073  ;;  %1091 = vrcp.f32 %v276_v42 }
  0x67   :  { %v1076_v52 = vpop.eup %1075  ;;  %1093 = vrcp.f32 %v275_v45  ;;  %v280_v59 = vadd.f32 1.0, %v1074_v49  ;;  %v404_v45 = vld [vmem:[%s1686_s1 + $0x40] sm:$0xff] }
  0x68   :  { %648 = vperm.xlu1 %898, %v1072_v44   ;;  %1095 = vrcp.f32 %v278_v47  ;;  %v279_v62 = vadd.f32 1.0, %v1076_v52  ;;  %v405_v44 = vld [vmem:[%s1686_s1 + $0x48] sm:$0xff] }
  0x69   :  { %v1078_v54 = vpop.eup %1077  ;;  %1097 = vrcp.f32 %v277_v50  ;;  %v407_v50 = vld [vmem:[%s1686_s1 + $0x58] sm:$0xff] }
  0x6a   :  { %v1080_v56 = vpop.eup %1079  ;;  %643 = vperm.xlu0 %897, %v1078_v54   ;;  %1099 = vpow2.f32 %v894_v53 }
  0x6b   :  { %v1082_v58 = vpop.eup %1081  ;;  %1101 = vpow2.f32 %v893_v55 }
  0x6c   :  { %v1084_v60 = vpop.eup %1083  ;;  %658 = vperm.xlu1 %898, %v1080_v56   ;;  %1103 = vpow2.f32 %v895_v57  ;;  %v409_v56 = vld [vmem:[%s1686_s1 + $0x68] sm:$0xff] }
  0x6d   :  { %v1086_v61 = vpop.eup %1085  ;;  %1105 = vrcp.f32 %v280_v59  ;;  %v282_v1 = vadd.f32 1.0, %v1084_v60 }
  0x6e   :  { %v1088_v63 = vpop.eup %1087  ;;  %653 = vperm.xlu0 %897, %v1082_v58   ;;  %1107 = vrcp.f32 %v279_v62  ;;  %v408_v58 = vld [vmem:[%s1686_s1 + $0x60] sm:$0xff] }
  0x6f   :  { %v1090_v0 = vpop.eup %1089  ;;  %v281_v3 = vadd.f32 1.0, %v1088_v63  ;;  %1109 = vrcp.f32 %v282_v1 }
  0x70   :  { %668 = vperm.xlu1 %898, %v1086_v61   ;;  %v1092_v2 = vpop.eup %1091  ;;  %v411_v61 = vld [vmem:[%s1686_s1 + $0x78] sm:$0xff] }
  0x71   :  { %v1094_v4 = vpop.eup %1093  ;;  %1111 = vrcp.f32 %v281_v3  ;;  %v413_v3 = vld [vmem:[%s1686_s1 + $0x88] sm:$0xff] }
  0x72   :  { %663 = vperm.xlu0 %897, %v1090_v0   ;;  %v1096_v5 = vpop.eup %1095  ;;  %v410_v0 = vld [vmem:[%s1686_s1 + $0x70] sm:$0xff] }
  0x73   :  { %v1098_v6 = vpop.eup %1097 }
  0x74   :  { %678 = vperm.xlu1 %898, %v1092_v2   ;;  %v1100_v7 = vpop.eup %1099 }
  0x75   :  { %v1102_v8 = vpop.eup %1101  ;;  %v284_v9 = vadd.f32 1.0, %v1100_v7 }
  0x76   :  { %673 = vperm.xlu0 %897, %v1094_v4   ;;  %v1104_v10 = vpop.eup %1103  ;;  %v283_v11 = vadd.f32 1.0, %v1102_v8 }
  0x77   :  { %v1106_v12 = vpop.eup %1105  ;;  %1113 = vrcp.f32 %v284_v9  ;;  %v285_v13 = vadd.f32 1.0, %v1104_v10  ;;  %v415_v9 = vld [vmem:[%s1686_s1 + $0x98] sm:$0xff] }
  0x78   :  { %688 = vperm.xlu1 %898, %v1096_v5   ;;  %1115 = vrcp.f32 %v283_v11  ;;  %v1108_v14 = vpop.eup %1107 }
  0x79   :  { %v1110_v15 = vpop.eup %1109  ;;  %1117 = vrcp.f32 %v285_v13 }
  0x7a   :  { %683 = vperm.xlu0 %897, %v1098_v6   ;;  %v412_v6 = vld [vmem:[%s1686_s1 + $0x80] sm:$0xff] }
  0x7b   :  { %v1112_v16 = vpop.eup %1111 }
  0x7c   :  { %698 = vperm.xlu1 %898, %v1106_v12   ;;  %v414_v12 = vld [vmem:[%s1686_s1 + $0x90] sm:$0xff] }
  0x7e   :  { %693 = vperm.xlu0 %897, %v1108_v14  }
  0x80   :  { %708 = vperm.xlu1 %898, %v1110_v15   ;;  %v417_v15 = vld [vmem:[%s1686_s1 + $0xa8] sm:$0xff] }
  0x81   :  { %v1114_v17 = vpop.eup %1113 }
  0x82   :  { %703 = vperm.xlu0 %897, %v1112_v16   ;;  %v1116_v18 = vpop.eup %1115 }
  0x83   :  { %v1118_v19 = vpop.eup %1117 }
  0x84   :  { %718 = vperm.xlu1 %898, %v1114_v17  }
  0x86   :  { %713 = vperm.xlu0 %897, %v1116_v18   ;;  %v416_v18 = vld [vmem:[%s1686_s1 + $0xa0] sm:$0xff] }
  0x8a   :  { %723 = vperm.xlu0 %897, %v1118_v19  }
  0x9b   :  { %v464_v22 = vpop.permute.xlu1 %463 }
  0x9c   :  { %v728_v23 = vmul.f32 %v464_v22, %v398_v20  ;;  %v454_v24 = vpop.permute.xlu0 %453 }
  0x9d   :  { %v726_v25 = vmul.f32 %v454_v24, %v396_v21  ;;  %v419_v21 = vld [vmem:[%s1686_s1 + $0xb8] sm:$0xff]  ;;  %v418_v24 = vld [vmem:[%s1686_s1 + $0xb0] sm:$0xff] }
  0x9e   :  { %784 = vst.msk [vmem:[%s1687_s2 + $0x10] sm:$0xff] %vm781_vm0, %v728_v23 }
  0x9f   :  { %782 = vst.msk [vmem:[%s1687_s2] sm:$0xff] %vm781_vm0, %v726_v25  ;;  %v469_v28 = vpop.permute.xlu1 %468 }
  0xa0   :  { %v729_v29 = vmul.f32 %v469_v28, %v399_v26  ;;  %v459_v30 = vpop.permute.xlu0 %458 }
  0xa1   :  { %v727_v31 = vmul.f32 %v459_v30, %v397_v27  ;;  %v421_v27 = vld [vmem:[%s1686_s1 + $0xc8] sm:$0xff]  ;;  %v420_v30 = vld [vmem:[%s1686_s1 + $0xc0] sm:$0xff] }
  0xa2   :  { %785 = vst.msk [vmem:[%s1687_s2 + $0x18] sm:$0xff] %vm781_vm0, %v729_v29 }
  0xa3   :  { %783 = vst.msk [vmem:[%s1687_s2 + $0x8] sm:$0xff] %vm781_vm0, %v727_v31  ;;  %v479_v34 = vpop.permute.xlu1 %478 }
  0xa4   :  { %v731_v35 = vmul.f32 %v479_v34, %v401_v32  ;;  %v474_v36 = vpop.permute.xlu0 %473 }
  0xa5   :  { %v730_v37 = vmul.f32 %v474_v36, %v400_v33  ;;  %v423_v33 = vld [vmem:[%s1686_s1 + $0xd8] sm:$0xff]  ;;  %v422_v36 = vld [vmem:[%s1686_s1 + $0xd0] sm:$0xff] }
  0xa6   :  { %787 = vst.msk [vmem:[%s1687_s2 + $0x28] sm:$0xff] %vm781_vm0, %v731_v35 }
  0xa7   :  { %786 = vst.msk [vmem:[%s1687_s2 + $0x20] sm:$0xff] %vm781_vm0, %v730_v37  ;;  %v489_v40 = vpop.permute.xlu1 %488 }
  0xa8   :  { %v733_v41 = vmul.f32 %v489_v40, %v403_v38  ;;  %v484_v42 = vpop.permute.xlu0 %483 }
  0xa9   :  { %v732_v43 = vmul.f32 %v484_v42, %v402_v39  ;;  %v425_v39 = vld [vmem:[%s1686_s1 + $0xe8] sm:$0xff]  ;;  %v424_v42 = vld [vmem:[%s1686_s1 + $0xe0] sm:$0xff] }
  0xaa   :  { %789 = vst.msk [vmem:[%s1687_s2 + $0x38] sm:$0xff] %vm781_vm0, %v733_v41 }
  0xab   :  { %788 = vst.msk [vmem:[%s1687_s2 + $0x30] sm:$0xff] %vm781_vm0, %v732_v43  ;;  %v499_v46 = vpop.permute.xlu1 %498 }
  0xac   :  { %v735_v47 = vmul.f32 %v499_v46, %v405_v44  ;;  %v494_v48 = vpop.permute.xlu0 %493 }
  0xad   :  { %v734_v49 = vmul.f32 %v494_v48, %v404_v45  ;;  %v427_v45 = vld [vmem:[%s1686_s1 + $0xf8] sm:$0xff]  ;;  %v426_v48 = vld [vmem:[%s1686_s1 + $0xf0] sm:$0xff] }
  0xae   :  { %791 = vst.msk [vmem:[%s1687_s2 + $0x48] sm:$0xff] %vm781_vm0, %v735_v47 }
  0xaf   :  { %790 = vst.msk [vmem:[%s1687_s2 + $0x40] sm:$0xff] %vm781_vm0, %v734_v49  ;;  %v509_v52 = vpop.permute.xlu1 %508 }
  0xb0   :  { %v737_v53 = vmul.f32 %v509_v52, %v407_v50  ;;  %v504_v54 = vpop.permute.xlu0 %503 }
  0xb1   :  { %v736_v55 = vmul.f32 %v504_v54, %v406_v51  ;;  %v429_v51 = vld [vmem:[%s1686_s1 + $0x108] sm:$0xff]  ;;  %v428_v54 = vld [vmem:[%s1686_s1 + $0x100] sm:$0xff] }
  0xb2   :  { %793 = vst.msk [vmem:[%s1687_s2 + $0x58] sm:$0xff] %vm781_vm0, %v737_v53 }
  0xb3   :  { %792 = vst.msk [vmem:[%s1687_s2 + $0x50] sm:$0xff] %vm781_vm0, %v736_v55  ;;  %v519_v57 = vpop.permute.xlu1 %518 }
  0xb4   :  { %v739_v59 = vmul.f32 %v519_v57, %v409_v56  ;;  %v431_v57 = vld [vmem:[%s1686_s1 + $0x118] sm:$0xff] }
  0xb5   :  { %v514_v60 = vpop.permute.xlu0 %513 }
  0xb6   :  { %795 = vst.msk [vmem:[%s1687_s2 + $0x68] sm:$0xff] %vm781_vm0, %v739_v59  ;;  %v738_v62 = vmul.f32 %v514_v60, %v408_v58  ;;  %v430_v60 = vld [vmem:[%s1686_s1 + $0x110] sm:$0xff] }
  0xb7   :  { %v529_v63 = vpop.permute.xlu1 %528 }
  0xb8   :  { %794 = vst.msk [vmem:[%s1687_s2 + $0x60] sm:$0xff] %vm781_vm0, %v738_v62  ;;  %v741_v1 = vmul.f32 %v529_v63, %v411_v61  ;;  %v433_v63 = vld [vmem:[%s1686_s1 + $0x128] sm:$0xff] }
  0xb9   :  { %v524_v2 = vpop.permute.xlu0 %523 }
  0xba   :  { %797 = vst.msk [vmem:[%s1687_s2 + $0x78] sm:$0xff] %vm781_vm0, %v741_v1  ;;  %v740_v4 = vmul.f32 %v524_v2, %v410_v0  ;;  %v432_v2 = vld [vmem:[%s1686_s1 + $0x120] sm:$0xff] }
  0xbb   :  { %v539_v5 = vpop.permute.xlu1 %538 }
  0xbc   :  { %796 = vst.msk [vmem:[%s1687_s2 + $0x70] sm:$0xff] %vm781_vm0, %v740_v4  ;;  %v743_v7 = vmul.f32 %v539_v5, %v413_v3  ;;  %v435_v5 = vld [vmem:[%s1686_s1 + $0x138] sm:$0xff] }
  0xbd   :  { %v534_v8 = vpop.permute.xlu0 %533 }
  0xbe   :  { %799 = vst.msk [vmem:[%s1687_s2 + $0x88] sm:$0xff] %vm781_vm0, %v743_v7  ;;  %v742_v10 = vmul.f32 %v534_v8, %v412_v6  ;;  %v434_v8 = vld [vmem:[%s1686_s1 + $0x130] sm:$0xff] }
  0xbf   :  { %v549_v11 = vpop.permute.xlu1 %548 }
  0xc0   :  { %798 = vst.msk [vmem:[%s1687_s2 + $0x80] sm:$0xff] %vm781_vm0, %v742_v10  ;;  %v745_v13 = vmul.f32 %v549_v11, %v415_v9  ;;  %v437_v11 = vld [vmem:[%s1686_s1 + $0x148] sm:$0xff] }
  0xc1   :  { %v544_v14 = vpop.permute.xlu0 %543 }
  0xc2   :  { %801 = vst.msk [vmem:[%s1687_s2 + $0x98] sm:$0xff] %vm781_vm0, %v745_v13  ;;  %v744_v16 = vmul.f32 %v544_v14, %v414_v12  ;;  %v436_v14 = vld [vmem:[%s1686_s1 + $0x140] sm:$0xff] }
  0xc3   :  { %v559_v17 = vpop.permute.xlu1 %558 }
  0xc4   :  { %800 = vst.msk [vmem:[%s1687_s2 + $0x90] sm:$0xff] %vm781_vm0, %v744_v16  ;;  %v747_v19 = vmul.f32 %v559_v17, %v417_v15  ;;  %v439_v17 = vld [vmem:[%s1686_s1 + $0x158] sm:$0xff] }
  0xc5   :  { %v554_v20 = vpop.permute.xlu0 %553 }
  0xc6   :  { %803 = vst.msk [vmem:[%s1687_s2 + $0xa8] sm:$0xff] %vm781_vm0, %v747_v19  ;;  %v746_v22 = vmul.f32 %v554_v20, %v416_v18  ;;  %v438_v20 = vld [vmem:[%s1686_s1 + $0x150] sm:$0xff] }
  0xc7   :  { %v569_v23 = vpop.permute.xlu1 %568 }
  0xc8   :  { %802 = vst.msk [vmem:[%s1687_s2 + $0xa0] sm:$0xff] %vm781_vm0, %v746_v22  ;;  %v749_v25 = vmul.f32 %v569_v23, %v419_v21  ;;  %v441_v23 = vld [vmem:[%s1686_s1 + $0x168] sm:$0xff] }
  0xc9   :  { %v564_v26 = vpop.permute.xlu0 %563 }
  0xca   :  { %805 = vst.msk [vmem:[%s1687_s2 + $0xb8] sm:$0xff] %vm781_vm0, %v749_v25  ;;  %v748_v28 = vmul.f32 %v564_v26, %v418_v24  ;;  %v440_v26 = vld [vmem:[%s1686_s1 + $0x160] sm:$0xff] }
  0xcb   :  { %v579_v29 = vpop.permute.xlu1 %578 }
  0xcc   :  { %804 = vst.msk [vmem:[%s1687_s2 + $0xb0] sm:$0xff] %vm781_vm0, %v748_v28  ;;  %v751_v31 = vmul.f32 %v579_v29, %v421_v27  ;;  %v443_v29 = vld [vmem:[%s1686_s1 + $0x178] sm:$0xff] }
  0xcd   :  { %v574_v32 = vpop.permute.xlu0 %573 }
  0xce   :  { %807 = vst.msk [vmem:[%s1687_s2 + $0xc8] sm:$0xff] %vm781_vm0, %v751_v31  ;;  %v750_v34 = vmul.f32 %v574_v32, %v420_v30  ;;  %v442_v32 = vld [vmem:[%s1686_s1 + $0x170] sm:$0xff] }
  0xcf   :  { %v589_v35 = vpop.permute.xlu1 %588 }
  0xd0   :  { %806 = vst.msk [vmem:[%s1687_s2 + $0xc0] sm:$0xff] %vm781_vm0, %v750_v34  ;;  %v753_v37 = vmul.f32 %v589_v35, %v423_v33  ;;  %v445_v35 = vld [vmem:[%s1686_s1 + $0x188] sm:$0xff] }
  0xd1   :  { %v584_v38 = vpop.permute.xlu0 %583 }
  0xd2   :  { %809 = vst.msk [vmem:[%s1687_s2 + $0xd8] sm:$0xff] %vm781_vm0, %v753_v37  ;;  %v752_v40 = vmul.f32 %v584_v38, %v422_v36  ;;  %v444_v38 = vld [vmem:[%s1686_s1 + $0x180] sm:$0xff] }
  0xd3   :  { %v599_v41 = vpop.permute.xlu1 %598 }
  0xd4   :  { %808 = vst.msk [vmem:[%s1687_s2 + $0xd0] sm:$0xff] %vm781_vm0, %v752_v40  ;;  %v755_v43 = vmul.f32 %v599_v41, %v425_v39  ;;  %v447_v41 = vld [vmem:[%s1686_s1 + $0x198] sm:$0xff] }
  0xd5   :  { %v594_v44 = vpop.permute.xlu0 %593 }
  0xd6   :  { %811 = vst.msk [vmem:[%s1687_s2 + $0xe8] sm:$0xff] %vm781_vm0, %v755_v43  ;;  %v754_v46 = vmul.f32 %v594_v44, %v424_v42  ;;  %v446_v44 = vld [vmem:[%s1686_s1 + $0x190] sm:$0xff] }
  0xd7   :  { %v609_v47 = vpop.permute.xlu1 %608 }
  0xd8   :  { %810 = vst.msk [vmem:[%s1687_s2 + $0xe0] sm:$0xff] %vm781_vm0, %v754_v46  ;;  %v757_v49 = vmul.f32 %v609_v47, %v427_v45  ;;  %v449_v47 = vld [vmem:[%s1686_s1 + $0x1a8] sm:$0xff] }
  0xd9   :  { %v604_v50 = vpop.permute.xlu0 %603 }
  0xda   :  { %813 = vst.msk [vmem:[%s1687_s2 + $0xf8] sm:$0xff] %vm781_vm0, %v757_v49  ;;  %v756_v52 = vmul.f32 %v604_v50, %v426_v48  ;;  %v448_v50 = vld [vmem:[%s1686_s1 + $0x1a0] sm:$0xff] }
  0xdb   :  { %v619_v53 = vpop.permute.xlu1 %618 }
  0xdc   :  { %812 = vst.msk [vmem:[%s1687_s2 + $0xf0] sm:$0xff] %vm781_vm0, %v756_v52  ;;  %v759_v55 = vmul.f32 %v619_v53, %v429_v51 }
  0xdd   :  { %v614_v56 = vpop.permute.xlu0 %613 }
  0xde   :  { %815 = vst.msk [vmem:[%s1687_s2 + $0x108] sm:$0xff] %vm781_vm0, %v759_v55  ;;  %v758_v58 = vmul.f32 %v614_v56, %v428_v54  ;;  %v450_v54 = vld [vmem:[%s1686_s1 + $0x1b0] sm:$0xff] }
  0xdf   :  { %v629_v59 = vpop.permute.xlu1 %628 }
  0xe0   :  { %814 = vst.msk [vmem:[%s1687_s2 + $0x100] sm:$0xff] %vm781_vm0, %v758_v58  ;;  %v761_v61 = vmul.f32 %v629_v59, %v431_v57 }
  0xe1   :  { %v624_v62 = vpop.permute.xlu0 %623 }
  0xe2   :  { %817 = vst.msk [vmem:[%s1687_s2 + $0x118] sm:$0xff] %vm781_vm0, %v761_v61  ;;  %v760_v0 = vmul.f32 %v624_v62, %v430_v60 }
  0xe3   :  { %v639_v1 = vpop.permute.xlu1 %638 }
  0xe4   :  { %816 = vst.msk [vmem:[%s1687_s2 + $0x110] sm:$0xff] %vm781_vm0, %v760_v0  ;;  %v763_v3 = vmul.f32 %v639_v1, %v433_v63 }
  0xe5   :  { %v634_v4 = vpop.permute.xlu0 %633 }
  0xe6   :  { %819 = vst.msk [vmem:[%s1687_s2 + $0x128] sm:$0xff] %vm781_vm0, %v763_v3  ;;  %v762_v6 = vmul.f32 %v634_v4, %v432_v2 }
  0xe7   :  { %v649_v7 = vpop.permute.xlu1 %648 }
  0xe8   :  { %818 = vst.msk [vmem:[%s1687_s2 + $0x120] sm:$0xff] %vm781_vm0, %v762_v6  ;;  %v765_v9 = vmul.f32 %v649_v7, %v435_v5 }
  0xe9   :  { %v644_v10 = vpop.permute.xlu0 %643 }
  0xea   :  { %821 = vst.msk [vmem:[%s1687_s2 + $0x138] sm:$0xff] %vm781_vm0, %v765_v9  ;;  %v764_v12 = vmul.f32 %v644_v10, %v434_v8 }
  0xeb   :  { %v659_v13 = vpop.permute.xlu1 %658 }
  0xec   :  { %820 = vst.msk [vmem:[%s1687_s2 + $0x130] sm:$0xff] %vm781_vm0, %v764_v12  ;;  %v767_v15 = vmul.f32 %v659_v13, %v437_v11 }
  0xed   :  { %v654_v16 = vpop.permute.xlu0 %653 }
  0xee   :  { %823 = vst.msk [vmem:[%s1687_s2 + $0x148] sm:$0xff] %vm781_vm0, %v767_v15  ;;  %v766_v18 = vmul.f32 %v654_v16, %v436_v14 }
  0xef   :  { %v669_v19 = vpop.permute.xlu1 %668 }
  0xf0   :  { %822 = vst.msk [vmem:[%s1687_s2 + $0x140] sm:$0xff] %vm781_vm0, %v766_v18  ;;  %v769_v21 = vmul.f32 %v669_v19, %v439_v17 }
  0xf1   :  { %v664_v22 = vpop.permute.xlu0 %663 }
  0xf2   :  { %825 = vst.msk [vmem:[%s1687_s2 + $0x158] sm:$0xff] %vm781_vm0, %v769_v21  ;;  %v768_v24 = vmul.f32 %v664_v22, %v438_v20 }
  0xf3   :  { %v679_v25 = vpop.permute.xlu1 %678 }
  0xf4   :  { %824 = vst.msk [vmem:[%s1687_s2 + $0x150] sm:$0xff] %vm781_vm0, %v768_v24  ;;  %v771_v27 = vmul.f32 %v679_v25, %v441_v23 }
  0xf5   :  { %v674_v28 = vpop.permute.xlu0 %673 }
  0xf6   :  { %827 = vst.msk [vmem:[%s1687_s2 + $0x168] sm:$0xff] %vm781_vm0, %v771_v27  ;;  %v770_v30 = vmul.f32 %v674_v28, %v440_v26 }
  0xf7   :  { %v689_v31 = vpop.permute.xlu1 %688 }
  0xf8   :  { %826 = vst.msk [vmem:[%s1687_s2 + $0x160] sm:$0xff] %vm781_vm0, %v770_v30  ;;  %v773_v33 = vmul.f32 %v689_v31, %v443_v29 }
  0xf9   :  { %v684_v34 = vpop.permute.xlu0 %683 }
  0xfa   :  { %829 = vst.msk [vmem:[%s1687_s2 + $0x178] sm:$0xff] %vm781_vm0, %v773_v33  ;;  %v772_v36 = vmul.f32 %v684_v34, %v442_v32 }
  0xfb   :  { %v699_v37 = vpop.permute.xlu1 %698 }
  0xfc   :  { %828 = vst.msk [vmem:[%s1687_s2 + $0x170] sm:$0xff] %vm781_vm0, %v772_v36  ;;  %v775_v39 = vmul.f32 %v699_v37, %v445_v35 }
  0xfd   :  { %v694_v40 = vpop.permute.xlu0 %693 }
  0xfe   :  { %831 = vst.msk [vmem:[%s1687_s2 + $0x188] sm:$0xff] %vm781_vm0, %v775_v39  ;;  %v774_v42 = vmul.f32 %v694_v40, %v444_v38 }
  0xff   :  { %v709_v43 = vpop.permute.xlu1 %708 }
 0x100   :  { %830 = vst.msk [vmem:[%s1687_s2 + $0x180] sm:$0xff] %vm781_vm0, %v774_v42  ;;  %v777_v45 = vmul.f32 %v709_v43, %v447_v41 }
 0x101   :  { %v704_v46 = vpop.permute.xlu0 %703 }
 0x102   :  { %833 = vst.msk [vmem:[%s1687_s2 + $0x198] sm:$0xff] %vm781_vm0, %v777_v45  ;;  %v776_v48 = vmul.f32 %v704_v46, %v446_v44 }
 0x103   :  { %v719_v49 = vpop.permute.xlu1 %718 }
 0x104   :  { %832 = vst.msk [vmem:[%s1687_s2 + $0x190] sm:$0xff] %vm781_vm0, %v776_v48  ;;  %v779_v51 = vmul.f32 %v719_v49, %v449_v47 }
 0x105   :  { %v714_v52 = vpop.permute.xlu0 %713 }
 0x106   :  { %835 = vst.msk [vmem:[%s1687_s2 + $0x1a8] sm:$0xff] %vm781_vm0, %v779_v51  ;;  %v778_v53 = vmul.f32 %v714_v52, %v448_v50 }
 0x108   :  { %834 = vst.msk [vmem:[%s1687_s2 + $0x1a0] sm:$0xff] %vm781_vm0, %v778_v53 }
 0x109   :  { %v724_v55 = vpop.permute.xlu0 %723 }
 0x10a   :  { %v780_v56 = vmul.f32 %v724_v55, %v450_v54 }
 0x10c   :  { %836 = vst.msk [vmem:[%s1687_s2 + $0x1b0] sm:$0xff] %vm781_vm0, %v780_v56 }

</bundles_post_ra>
